<compile_context>
chip_gen: v5e
topology: v5e:2x2
jax: 0.10.0
libtpu: 0.0.40
codegen_flags: <defaults>
</compile_context>

<pallas_src>
import functools
import math

import jax
import jax.numpy as jnp
from jax.experimental import pallas as pl
from jax.experimental.pallas import tpu as pltpu


def _fused_mlp_kernel(*refs, n_layers, compute_dtype):
    """refs = (x, w0, b0, w1, b1, ..., w{L-1}, b{L-1}, out).

    One batch tile per grid step; all layers computed back-to-back with the activation kept
    on-chip.  Matmuls feed the MXU in `compute_dtype` with f32 accumulation; bias-add / ReLU run
    on the f32 accumulator, then hidden activations drop back to `compute_dtype`.
    """
    x_ref = refs[0]
    o_ref = refs[-1]
    p_refs = refs[1:-1]

    h = x_ref[...]                                           # (TB, Cin), compute dtype
    for i in range(n_layers):
        w = p_refs[2 * i][...]                               # (Cin_i, Cout_i), compute dtype
        b = p_refs[2 * i + 1][...]                           # (1, Cout_i), f32
        y = jnp.dot(h, w, preferred_element_type=jnp.float32) + b   # MXU + f32 epilogue
        if i < n_layers - 1:
            h = jnp.maximum(y, 0.0).astype(compute_dtype)    # ReLU, back to bf16 (halves live VMEM)
        else:
            h = y                                            # final layer: no activation
    # reshape is a no-op on the plain path; folds to (tb*Cout/128, 128) on the lane-dense path.
    o_ref[...] = h.astype(o_ref.dtype).reshape(o_ref.shape)


def _choose_batch_tile(batch, tb_cap):
    """Largest batch tile that (a) divides the batch, (b) fits the VMEM-derived cap and
    (c) keeps >= 2 grid steps for large batches (megacore sharding on v7x, DMA/compute overlap)."""
    for tb in (2048, 1024, 512, 256, 128, 64, 32, 16, 8):
        if tb <= tb_cap and batch % tb == 0 and batch // tb >= 2:
            return tb
    if batch <= tb_cap:                       # tiny batch: single block (full dim is layout-legal)
        return batch
    # Last resort: largest sublane-aligned divisor that fits the cap.
    start = max(8, tb_cap - (tb_cap % 8))
    for tb in range(start, 7, -8):
        if batch % tb == 0:
            return tb
    return batch


def fused_mlp_pallas(x, params, *, compute_dtype=jnp.bfloat16, out_dtype=jnp.float32):
    """x: (B, Cin) float32.  params: list of (w (Cin,Cout) compute_dtype, b (1,Cout) f32)."""
    B, Cin = x.shape
    n_layers = len(params)
    Cout = params[-1][0].shape[1]

    x_c = x.astype(compute_dtype)                            # halve HBM traffic on activations
    act_isz = jnp.dtype(compute_dtype).itemsize
    out_isz = jnp.dtype(out_dtype).itemsize
    param_bytes = sum(int(w.size) * w.dtype.itemsize + int(b.size) * b.dtype.itemsize
                      for (w, b) in params)
    max_width = max([Cin] + [w.shape[1] for (w, _) in params])

    # ---- generation-aware VMEM budget ---------------------------------------------------------
    try:
        vmem_cap = int(pltpu.get_tpu_info().vmem_capacity_bytes)
    except Exception:
        vmem_cap = 64 << 20                                  # conservative: v7x per-TC size
    vmem_budget = int(vmem_cap * 0.8)                        # headroom for Mosaic scratch/spills

    if param_bytes > int(0.6 * vmem_cap):
        # TODO(synk): stream weight tiles from HBM (pl.ANY + pltpu.emit_pipeline) or tile the
        # widest layer's output channels as a second grid axis instead of keeping all resident.
        raise NotImplementedError("MLP weights too large to keep VMEM-resident in one fused call")

    # Per batch-row VMEM: double-buffered x and out tiles + live activation of the widest layer
    # (f32 accumulator + compute-dtype copy).  Params are charged once (single-buffered below).
    per_row = 2 * Cin * act_isz + 2 * Cout * out_isz + max_width * (4 + act_isz)
    tb_cap = max(8, (vmem_budget - param_bytes) // max(per_row, 1))
    tb = _choose_batch_tile(B, tb_cap)
    grid = (B // tb,)

    # ---- lane-dense output: fold (tb, Cout) -> (tb*Cout/128, 128) when Cout is narrow ---------
    fold_out = (Cout % 128 != 0) and ((tb * Cout) % (8 * 128) == 0)
    if fold_out:
        out_shape = jax.ShapeDtypeStruct((B * Cout // 128, 128), out_dtype)
        out_specs = pl.BlockSpec((tb * Cout // 128, 128), lambda i: (i, 0))
    else:
        out_shape = jax.ShapeDtypeStruct((B, Cout), out_dtype)
        out_specs = pl.BlockSpec((tb, Cout), lambda i: (i, 0))

    flat_params = []
    for (w, b) in params:
        flat_params += [w, b]

    # Always pass an explicit VMEM limit (v5e scoped default is only 16 MiB); cap below physical.
    block_bytes = param_bytes + 2 * tb * Cin * act_isz + 2 * tb * Cout * out_isz
    vmem_limit = min(int(vmem_cap * 0.9), max(32 << 20, block_bytes + (16 << 20)))

    flops = 2 * B * sum(w.shape[0] * w.shape[1] for (w, _) in params)
    bytes_accessed = int(x_c.size) * act_isz + param_bytes + B * Cout * out_isz

    kernel = functools.partial(_fused_mlp_kernel, n_layers=n_layers, compute_dtype=compute_dtype)

    def _call(single_buffer_params):
        in_specs = [pl.BlockSpec((tb, Cin), lambda i: (i, 0))]
        for (w, b) in params:
            for shape in (w.shape, b.shape):
                if single_buffer_params:
                    # Grid-invariant (index_map -> (0,0)): single-buffer to halve resident VMEM.
                    spec = pl.BlockSpec(shape, lambda i: (0, 0), pipeline_mode=pl.Buffered(1))
                else:
                    spec = pl.BlockSpec(shape, lambda i: (0, 0))
                in_specs.append(spec)
        return pl.pallas_call(
            kernel,
            out_shape=out_shape,
            grid=grid,
            in_specs=in_specs,
            out_specs=out_specs,
            compiler_params=pltpu.CompilerParams(
                dimension_semantics=("parallel",),
                vmem_limit_bytes=vmem_limit),
            cost_estimate=pl.CostEstimate(flops=flops, transcendentals=0,
                                          bytes_accessed=int(bytes_accessed)),
        )(x_c, *flat_params)

    try:
        out = _call(True)
    except Exception:
        # pipeline_mode=pl.Buffered(1) not supported by this jax version/backend: fall back to the
        # default (double-buffered) resident-parameter specs.
        out = _call(False)

    if fold_out:
        out = out.reshape(B, Cout)
    return out


class MLP:
    """JAX/Pallas port of the PyTorch MLP module (bn=None)."""

    def __init__(self, in_channel, layer_dims, key, compute_dtype=jnp.bfloat16,
                 out_dtype=jnp.float32):
        self.compute_dtype = compute_dtype
        self.out_dtype = out_dtype
        self.params_f32 = []
        last_channel = in_channel
        for out_channel in layer_dims:
            key, wk, bk = jax.random.split(key, 3)
            # Deterministic init mimicking torch.nn.Linear defaults
            # (uniform in [-1/sqrt(fan_in), 1/sqrt(fan_in)]).
            bound = 1.0 / math.sqrt(last_channel)
            w = jax.random.uniform(wk, (last_channel, out_channel), jnp.float32, -bound, bound)
            b = jax.random.uniform(bk, (1, out_channel), jnp.float32, -bound, bound)
            self.params_f32.append((w, b))
            last_channel = out_channel
        # Pre-cast MXU operands once; bias stays f32 (f32 bias-add / ReLU epilogue).
        self.params = [(w.astype(compute_dtype), b) for (w, b) in self.params_f32]
        self.n_layers = len(layer_dims)

    def __call__(self, x):
        return fused_mlp_pallas(x, self.params, compute_dtype=self.compute_dtype,
                                out_dtype=self.out_dtype)


if __name__ == "__main__":
    key = jax.random.PRNGKey(0)
    key, xk, pk = jax.random.split(key, 3)

    batch = 8
    in_channel = 16
    layer_dims = [32, 32, 8]

    x = jax.random.normal(xk, (batch, in_channel), jnp.float32)

    model = MLP(in_channel, layer_dims, pk)
    out = jax.block_until_ready(model(x))
    assert out.shape == (batch, layer_dims[-1])

    # Reference 1: same math as the kernel (bf16 MXU operands, f32 accumulate/epilogue).
    ref = x.astype(model.compute_dtype)
    for i, (w, b) in enumerate(model.params):
        ref = jnp.dot(ref, w, preferred_element_type=jnp.float32) + b
        if i < model.n_layers - 1:
            ref = jnp.maximum(ref, 0.0).astype(model.compute_dtype)
    ref = ref.astype(jnp.float32)
    assert jnp.allclose(out, ref, atol=1e-3, rtol=1e-3), float(jnp.max(jnp.abs(out - ref)))

    # Reference 2: full-f32 PyTorch-equivalent forward (loose tol for bf16 MXU operands).
    ref32 = x
    for i, (w, b) in enumerate(model.params_f32):
        ref32 = ref32 @ w + b
        if i < model.n_layers - 1:
            ref32 = jnp.maximum(ref32, 0.0)
    assert jnp.allclose(out, ref32, atol=5e-2, rtol=5e-2)

    print("KERNEL_OK")
</pallas_src>

<mosaic_0001>
module attributes {stable_mosaic.version = 11 : i64} {
  func.func @_fused_mlp_kernel(%arg0: i32, %arg1: memref<8x16xbf16, #tpu.memory_space<vmem>>, %arg2: memref<16x32xbf16, #tpu.memory_space<vmem>>, %arg3: memref<1x32xf32, #tpu.memory_space<vmem>>, %arg4: memref<32x32xbf16, #tpu.memory_space<vmem>>, %arg5: memref<1x32xf32, #tpu.memory_space<vmem>>, %arg6: memref<32x8xbf16, #tpu.memory_space<vmem>>, %arg7: memref<1x8xf32, #tpu.memory_space<vmem>>, %arg8: memref<8x8xf32, #tpu.memory_space<vmem>>) attributes {dimension_semantics = [#tpu.dimension_semantics<parallel>], iteration_bounds = array<i64: 1>, scalar_prefetch = 0 : i64, scratch_operands = 0 : i64, tpu.core_type = #tpu.core_type<tc>, window_params = [{transform_indices = @transform_0, window_bounds = array<i64: 8, 16>}, {pipeline_mode = #tpu.pipeline_mode<synchronous>, transform_indices = @transform_1, window_bounds = array<i64: 16, 32>}, {pipeline_mode = #tpu.pipeline_mode<synchronous>, transform_indices = @transform_2, window_bounds = array<i64: 1, 32>}, {pipeline_mode = #tpu.pipeline_mode<synchronous>, transform_indices = @transform_3, window_bounds = array<i64: 32, 32>}, {pipeline_mode = #tpu.pipeline_mode<synchronous>, transform_indices = @transform_4, window_bounds = array<i64: 1, 32>}, {pipeline_mode = #tpu.pipeline_mode<synchronous>, transform_indices = @transform_5, window_bounds = array<i64: 32, 8>}, {pipeline_mode = #tpu.pipeline_mode<synchronous>, transform_indices = @transform_6, window_bounds = array<i64: 1, 8>}, {transform_indices = @transform_7, window_bounds = array<i64: 8, 8>}]} {
    %c0 = arith.constant 0 : index
    %c0_0 = arith.constant 0 : index
    %0 = vector.load %arg1[%c0, %c0_0] : memref<8x16xbf16, #tpu.memory_space<vmem>>, vector<8x16xbf16>
    %c0_1 = arith.constant 0 : index
    %c0_2 = arith.constant 0 : index
    %1 = vector.load %arg2[%c0_1, %c0_2] : memref<16x32xbf16, #tpu.memory_space<vmem>>, vector<16x32xbf16>
    %c0_3 = arith.constant 0 : index
    %c0_4 = arith.constant 0 : index
    %2 = vector.load %arg3[%c0_3, %c0_4] : memref<1x32xf32, #tpu.memory_space<vmem>>, vector<1x32xf32>
    %cst = arith.constant dense<0.000000e+00> : vector<8x32xf32>
    %3 = tpu.matmul %0, %1, %cst {dimension_numbers = #tpu.dot_dimension_numbers<[1], [0], [0], [1], [0, 0, 1, 1], [], []>} : vector<8x16xbf16>, vector<16x32xbf16>, vector<8x32xf32> -> vector<8x32xf32>
    %4 = vector.broadcast %2 : vector<1x32xf32> to vector<8x32xf32>
    %5 = arith.addf %3, %4 : vector<8x32xf32>
    %cst_5 = arith.constant 0.000000e+00 : f32
    %6 = vector.broadcast %cst_5 : f32 to vector<8x32xf32>
    %7 = arith.maximumf %5, %6 : vector<8x32xf32>
    %8 = arith.truncf %7 : vector<8x32xf32> to vector<8x32xbf16>
    %c0_6 = arith.constant 0 : index
    %c0_7 = arith.constant 0 : index
    %9 = vector.load %arg4[%c0_6, %c0_7] : memref<32x32xbf16, #tpu.memory_space<vmem>>, vector<32x32xbf16>
    %c0_8 = arith.constant 0 : index
    %c0_9 = arith.constant 0 : index
    %10 = vector.load %arg5[%c0_8, %c0_9] : memref<1x32xf32, #tpu.memory_space<vmem>>, vector<1x32xf32>
    %cst_10 = arith.constant dense<0.000000e+00> : vector<8x32xf32>
    %11 = tpu.matmul %8, %9, %cst_10 {dimension_numbers = #tpu.dot_dimension_numbers<[1], [0], [0], [1], [0, 0, 1, 1], [], []>} : vector<8x32xbf16>, vector<32x32xbf16>, vector<8x32xf32> -> vector<8x32xf32>
    %12 = vector.broadcast %10 : vector<1x32xf32> to vector<8x32xf32>
    %13 = arith.addf %11, %12 : vector<8x32xf32>
    %cst_11 = arith.constant 0.000000e+00 : f32
    %14 = vector.broadcast %cst_11 : f32 to vector<8x32xf32>
    %15 = arith.maximumf %13, %14 : vector<8x32xf32>
    %16 = arith.truncf %15 : vector<8x32xf32> to vector<8x32xbf16>
    %c0_12 = arith.constant 0 : index
    %c0_13 = arith.constant 0 : index
    %17 = vector.load %arg6[%c0_12, %c0_13] : memref<32x8xbf16, #tpu.memory_space<vmem>>, vector<32x8xbf16>
    %c0_14 = arith.constant 0 : index
    %c0_15 = arith.constant 0 : index
    %18 = vector.load %arg7[%c0_14, %c0_15] : memref<1x8xf32, #tpu.memory_space<vmem>>, vector<1x8xf32>
    %cst_16 = arith.constant dense<0.000000e+00> : vector<8x8xf32>
    %19 = tpu.matmul %16, %17, %cst_16 {dimension_numbers = #tpu.dot_dimension_numbers<[1], [0], [0], [1], [0, 0, 1, 1], [], []>} : vector<8x32xbf16>, vector<32x8xbf16>, vector<8x8xf32> -> vector<8x8xf32>
    %20 = vector.broadcast %18 : vector<1x8xf32> to vector<8x8xf32>
    %21 = arith.addf %19, %20 : vector<8x8xf32>
    %c0_17 = arith.constant 0 : index
    %c0_18 = arith.constant 0 : index
    %22 = vector.load %arg8[%c0_17, %c0_18] : memref<8x8xf32, #tpu.memory_space<vmem>>, vector<8x8xf32>
    tpu.vector_store %arg8[%c0_17, %c0_18], %21 {strides = array<i32>} : memref<8x8xf32, #tpu.memory_space<vmem>>, vector<8x8xf32>,
    return
  }
  func.func @transform_0(%arg0: i32) -> (i32, i32) {
    %c0_i32 = arith.constant 0 : i32
    %c0_i32_0 = arith.constant 0 : i32
    return %arg0, %c0_i32 : i32, i32
  }
  func.func @transform_1(%arg0: i32) -> (i32, i32) {
    %c0_i32 = arith.constant 0 : i32
    %c0_i32_0 = arith.constant 0 : i32
    %c0_i32_1 = arith.constant 0 : i32
    return %c0_i32, %c0_i32_0 : i32, i32
  }
  func.func @transform_2(%arg0: i32) -> (i32, i32) {
    %c0_i32 = arith.constant 0 : i32
    %c0_i32_0 = arith.constant 0 : i32
    %c0_i32_1 = arith.constant 0 : i32
    return %c0_i32, %c0_i32_0 : i32, i32
  }
  func.func @transform_3(%arg0: i32) -> (i32, i32) {
    %c0_i32 = arith.constant 0 : i32
    %c0_i32_0 = arith.constant 0 : i32
    %c0_i32_1 = arith.constant 0 : i32
    return %c0_i32, %c0_i32_0 : i32, i32
  }
  func.func @transform_4(%arg0: i32) -> (i32, i32) {
    %c0_i32 = arith.constant 0 : i32
    %c0_i32_0 = arith.constant 0 : i32
    %c0_i32_1 = arith.constant 0 : i32
    return %c0_i32, %c0_i32_0 : i32, i32
  }
  func.func @transform_5(%arg0: i32) -> (i32, i32) {
    %c0_i32 = arith.constant 0 : i32
    %c0_i32_0 = arith.constant 0 : i32
    %c0_i32_1 = arith.constant 0 : i32
    return %c0_i32, %c0_i32_0 : i32, i32
  }
  func.func @transform_6(%arg0: i32) -> (i32, i32) {
    %c0_i32 = arith.constant 0 : i32
    %c0_i32_0 = arith.constant 0 : i32
    %c0_i32_1 = arith.constant 0 : i32
    return %c0_i32, %c0_i32_0 : i32, i32
  }
  func.func @transform_7(%arg0: i32) -> (i32, i32) {
    %c0_i32 = arith.constant 0 : i32
    %c0_i32_0 = arith.constant 0 : i32
    return %arg0, %c0_i32 : i32, i32
  }
}

module attributes {stable_mosaic.version = 11 : i64} {
  func.func @_fused_mlp_kernel(%arg0: i32, %arg1: memref<8x16xbf16, #tpu.memory_space<vmem>>, %arg2: memref<16x32xbf16, #tpu.memory_space<vmem>>, %arg3: memref<1x32xf32, #tpu.memory_space<vmem>>, %arg4: memref<32x32xbf16, #tpu.memory_space<vmem>>, %arg5: memref<1x32xf32, #tpu.memory_space<vmem>>, %arg6: memref<32x8xbf16, #tpu.memory_space<vmem>>, %arg7: memref<1x8xf32, #tpu.memory_space<vmem>>, %arg8: memref<8x8xf32, #tpu.memory_space<vmem>>) attributes {dimension_semantics = [#tpu.dimension_semantics<parallel>], iteration_bounds = array<i64: 1>, scalar_prefetch = 0 : i64, scratch_operands = 0 : i64, tpu.core_type = #tpu.core_type<tc>, window_params = [{transform_indices = @transform_0, window_bounds = array<i64: 8, 16>}, {pipeline_mode = #tpu.pipeline_mode<synchronous>, transform_indices = @transform_1, window_bounds = array<i64: 16, 32>}, {pipeline_mode = #tpu.pipeline_mode<synchronous>, transform_indices = @transform_2, window_bounds = array<i64: 1, 32>}, {pipeline_mode = #tpu.pipeline_mode<synchronous>, transform_indices = @transform_3, window_bounds = array<i64: 32, 32>}, {pipeline_mode = #tpu.pipeline_mode<synchronous>, transform_indices = @transform_4, window_bounds = array<i64: 1, 32>}, {pipeline_mode = #tpu.pipeline_mode<synchronous>, transform_indices = @transform_5, window_bounds = array<i64: 32, 8>}, {pipeline_mode = #tpu.pipeline_mode<synchronous>, transform_indices = @transform_6, window_bounds = array<i64: 1, 8>}, {transform_indices = @transform_7, window_bounds = array<i64: 8, 8>}]} {
    %c0 = arith.constant 0 : index
    %c0_0 = arith.constant 0 : index
    %0 = vector.load %arg1[%c0, %c0_0] : memref<8x16xbf16, #tpu.memory_space<vmem>>, vector<8x16xbf16>
    %c0_1 = arith.constant 0 : index
    %c0_2 = arith.constant 0 : index
    %1 = vector.load %arg2[%c0_1, %c0_2] : memref<16x32xbf16, #tpu.memory_space<vmem>>, vector<16x32xbf16>
    %c0_3 = arith.constant 0 : index
    %c0_4 = arith.constant 0 : index
    %2 = vector.load %arg3[%c0_3, %c0_4] : memref<1x32xf32, #tpu.memory_space<vmem>>, vector<1x32xf32>
    %cst = arith.constant dense<0.000000e+00> : vector<8x32xf32>
    %3 = tpu.matmul %0, %1, %cst {dimension_numbers = #tpu.dot_dimension_numbers<[1], [0], [0], [1], [0, 0, 1, 1], [], []>} : vector<8x16xbf16>, vector<16x32xbf16>, vector<8x32xf32> -> vector<8x32xf32>
    %4 = vector.broadcast %2 : vector<1x32xf32> to vector<8x32xf32>
    %5 = arith.addf %3, %4 : vector<8x32xf32>
    %cst_5 = arith.constant 0.000000e+00 : f32
    %6 = vector.broadcast %cst_5 : f32 to vector<8x32xf32>
    %7 = arith.maximumf %5, %6 : vector<8x32xf32>
    %8 = arith.truncf %7 : vector<8x32xf32> to vector<8x32xbf16>
    %c0_6 = arith.constant 0 : index
    %c0_7 = arith.constant 0 : index
    %9 = vector.load %arg4[%c0_6, %c0_7] : memref<32x32xbf16, #tpu.memory_space<vmem>>, vector<32x32xbf16>
    %c0_8 = arith.constant 0 : index
    %c0_9 = arith.constant 0 : index
    %10 = vector.load %arg5[%c0_8, %c0_9] : memref<1x32xf32, #tpu.memory_space<vmem>>, vector<1x32xf32>
    %cst_10 = arith.constant dense<0.000000e+00> : vector<8x32xf32>
    %11 = tpu.matmul %8, %9, %cst_10 {dimension_numbers = #tpu.dot_dimension_numbers<[1], [0], [0], [1], [0, 0, 1, 1], [], []>} : vector<8x32xbf16>, vector<32x32xbf16>, vector<8x32xf32> -> vector<8x32xf32>
    %12 = vector.broadcast %10 : vector<1x32xf32> to vector<8x32xf32>
    %13 = arith.addf %11, %12 : vector<8x32xf32>
    %cst_11 = arith.constant 0.000000e+00 : f32
    %14 = vector.broadcast %cst_11 : f32 to vector<8x32xf32>
    %15 = arith.maximumf %13, %14 : vector<8x32xf32>
    %16 = arith.truncf %15 : vector<8x32xf32> to vector<8x32xbf16>
    %c0_12 = arith.constant 0 : index
    %c0_13 = arith.constant 0 : index
    %17 = vector.load %arg6[%c0_12, %c0_13] : memref<32x8xbf16, #tpu.memory_space<vmem>>, vector<32x8xbf16>
    %c0_14 = arith.constant 0 : index
    %c0_15 = arith.constant 0 : index
    %18 = vector.load %arg7[%c0_14, %c0_15] : memref<1x8xf32, #tpu.memory_space<vmem>>, vector<1x8xf32>
    %cst_16 = arith.constant dense<0.000000e+00> : vector<8x8xf32>
    %19 = tpu.matmul %16, %17, %cst_16 {dimension_numbers = #tpu.dot_dimension_numbers<[1], [0], [0], [1], [0, 0, 1, 1], [], []>} : vector<8x32xbf16>, vector<32x8xbf16>, vector<8x8xf32> -> vector<8x8xf32>
    %20 = vector.broadcast %18 : vector<1x8xf32> to vector<8x8xf32>
    %21 = arith.addf %19, %20 : vector<8x8xf32>
    %c0_17 = arith.constant 0 : index
    %c0_18 = arith.constant 0 : index
    %22 = vector.load %arg8[%c0_17, %c0_18] : memref<8x8xf32, #tpu.memory_space<vmem>>, vector<8x8xf32>
    tpu.vector_store %arg8[%c0_17, %c0_18], %21 {strides = array<i32>} : memref<8x8xf32, #tpu.memory_space<vmem>>, vector<8x8xf32>,
    return
  }
  func.func @transform_0(%arg0: i32) -> (i32, i32) {
    %c0_i32 = arith.constant 0 : i32
    %c0_i32_0 = arith.constant 0 : i32
    return %arg0, %c0_i32 : i32, i32
  }
  func.func @transform_1(%arg0: i32) -> (i32, i32) {
    %c0_i32 = arith.constant 0 : i32
    %c0_i32_0 = arith.constant 0 : i32
    %c0_i32_1 = arith.constant 0 : i32
    return %c0_i32, %c0_i32_0 : i32, i32
  }
  func.func @transform_2(%arg0: i32) -> (i32, i32) {
    %c0_i32 = arith.constant 0 : i32
    %c0_i32_0 = arith.constant 0 : i32
    %c0_i32_1 = arith.constant 0 : i32
    return %c0_i32, %c0_i32_0 : i32, i32
  }
  func.func @transform_3(%arg0: i32) -> (i32, i32) {
    %c0_i32 = arith.constant 0 : i32
    %c0_i32_0 = arith.constant 0 : i32
    %c0_i32_1 = arith.constant 0 : i32
    return %c0_i32, %c0_i32_0 : i32, i32
  }
  func.func @transform_4(%arg0: i32) -> (i32, i32) {
    %c0_i32 = arith.constant 0 : i32
    %c0_i32_0 = arith.constant 0 : i32
    %c0_i32_1 = arith.constant 0 : i32
    return %c0_i32, %c0_i32_0 : i32, i32
  }
  func.func @transform_5(%arg0: i32) -> (i32, i32) {
    %c0_i32 = arith.constant 0 : i32
    %c0_i32_0 = arith.constant 0 : i32
    %c0_i32_1 = arith.constant 0 : i32
    return %c0_i32, %c0_i32_0 : i32, i32
  }
  func.func @transform_6(%arg0: i32) -> (i32, i32) {
    %c0_i32 = arith.constant 0 : i32
    %c0_i32_0 = arith.constant 0 : i32
    %c0_i32_1 = arith.constant 0 : i32
    return %c0_i32, %c0_i32_0 : i32, i32
  }
  func.func @transform_7(%arg0: i32) -> (i32, i32) {
    %c0_i32 = arith.constant 0 : i32
    %c0_i32_0 = arith.constant 0 : i32
    return %arg0, %c0_i32 : i32, i32
  }
}

</mosaic_0001>

<bundles_post_ra>
// kernel: tpu_custom_call.1
= control target key start
LH: loop header
LB: loop body
LE: loop exit
PB: predicated region body
PF: predicated region fallthrough
CT: control target
= control target key end

     0   :  { %12 = vsyncpa [#allocation3], 0  ;;  %s413_s0 = inlined_call_operand.vmem [shape: bf16[8,16], index: 0, kind: input, shape index: {}]   ;;  %s414_s1 = inlined_call_operand.hbm [shape: bf16[16,32], index: 1, kind: input, shape index: {}]   ;;  %s415_s2 = inlined_call_operand.hbm [shape: f32[1,32], index: 2, kind: input, shape index: {}]   ;;  %s416_s3 = inlined_call_operand.vmem [shape: bf16[32,32], index: 3, kind: input, shape index: {}]   ;;  %s417_s4 = inlined_call_operand.hbm [shape: f32[1,32], index: 4, kind: input, shape index: {}]   ;;  %s418_s5 = inlined_call_operand.vmem [shape: bf16[32,8], index: 5, kind: input, shape index: {}]   ;;  %s419_s6 = inlined_call_operand.vmem [shape: f32[1,8], index: 6, kind: input, shape index: {}]   ;;  %s420_s7 = inlined_call_operand.hbm [shape: f32[8,8], index: 7, kind: output, shape index: {}]  }
   0x1   :  { %13 = vsyncpa [#allocation6], 0  ;;  %s35_s26 = sshll.u32 %s415_s2, 4  ;;  %s36_s26 = int_to_ptr.hbm [resolvable:$true] %s35_s26 }
   0x2   :  { %14 = vsyncpa [#allocation4], 0  ;;  %s337_s27 = smov [#allocation5]   ;;  %s21_s8 = sshll.u32 %s414_s1, 4  ;;  %s22_s8 = int_to_ptr.hbm [resolvable:$true] %s21_s8 }
   0x3   :  { %s37_s28 = sshll.u32 %s337_s27, 4  ;;  %s338_s9 = smov [#allocation2]   ;;  %s38_s28 = int_to_ptr.vmem [resolvable:$true] %s37_s28 }
   0x4   :  { %40 = dma.hbm_to_vmem [thread:$0]  %s36_s26, 16, %s38_s28, [#allocation6]  }
   0x5   :  { %s23_s10 = sshll.u32 %s338_s9, 4  ;;  %s339_s11 = smov 64   ;;  %s24_s10 = int_to_ptr.vmem [resolvable:$true] %s23_s10 }
   0x6   :  { %s340_s12 = smov 4   ;;  %s48_s2 = sshll.u32 %s417_s4, 4  ;;  %s49_s2 = int_to_ptr.hbm [resolvable:$true] %s48_s2 }
   0x7   :  { %29 = dma.hbm_to_vmem [thread:$0]  %s22_s8, 128, %s24_s10, [#allocation3], %s339_s11, %s339_s11, %s340_s12  }
   0x8   :  { %s341_s15 = smov [#allocation7]  }
   0x9   :  { %s50_s16 = sshll.u32 %s341_s15, 4  ;;  %s51_s16 = int_to_ptr.vmem [resolvable:$true] %s50_s16 }
   0xa   :  { %53 = dma.hbm_to_vmem [thread:$0]  %s49_s2, 16, %s51_s16, [#allocation6]  }
   0xb   :  { %331 = dma.done.wait [#allocation3], 128  }
   0xc   :  { %332 = vsyncadd [#allocation3], 4294967168 }
   0xd   :  { %333 = dma.done.wait [#allocation6], 32  }
   0xe   :  { %334 = vsyncadd [#allocation6], 4294967264  ;;  %v221_v0 = vld [vmem:[#allocation2] sm:$0xff]  ;;  %vm84_vm0 = vcmask 130048   ;;  %v223_v2 = vld [vmem:[%s416_s3 + $0x8] sm:$0xff]  ;;  %vm123_vm1 = vcmask 261120  }
   0xf   :  { %95 = vmatpush.bf16.msra.mxu0 %v221_v0  ;;  %v71_v1 = vld [vmem:[%s413_s0] sm:$0xf]  ;;  %133 = vmatpush.bf16.msra.mxu1 %v223_v2  ;;  %v232_v4 = vld [vmem:[#allocation5] ss:$0 sm:$0xff]  ;;  %v233_v12 = vld [vmem:[#allocation7] ss:$0 sm:$0xff] }
  0x10   :  { %v222_v3 = vld [vmem:[%s416_s3] sm:$0xff]  ;;  %v225_v10 = vld [vmem:[%s418_s5 + $0x8] sm:$0xff]  ;;  %s342_s25 = smov [#allocation8]   ;;  %s187_s29 = sshll.u32 %s420_s7, 4  ;;  %vm178_vm2 = vcmask 64512   ;;  %s188_s29 = int_to_ptr.hbm [resolvable:$true] %s187_s29 }
  0x11   :  { %171 = vmatpush.bf16.msra.mxu2 %v225_v10  ;;  %v224_v11 = vld [vmem:[%s418_s5] sm:$0xff]  ;;  %s185_s26 = sshll.u32 %s342_s25, 4  ;;  %s186_s26 = int_to_ptr.vmem [resolvable:$true] %s185_s26 }
  0x12   :  { %202 = vmatmul.msk.bf16.vlgmr.msra.gmra.mxu0 %vm84_vm0, %v71_v1  ;;  %v234_v18 = vld [vmem:[%s419_s6] ss:$0 sm:$0xff] }
  0x13   :  { %134 = vmatpush.bf16.msra.mxu1 %v222_v3 }
  0x15   :  { %172 = vmatpush.bf16.msra.mxu2 %v224_v11 }
  0x8f   :  { %v97_v5 = vpop.f32.mrf.mxu0 }
  0x90   :  { %v98_v6 = vadd.f32 %v232_v4, %v97_v5 }
  0x92   :  { %v101_v7 = vmax.f32 %v98_v6, 0.0 }
  0x94   :  { %v102_v8 = vpack.c.bf16 %v101_v7, %v101_v7 }
  0x96   :  { %211 = vmatmul.msk.bf16.vlgmr.msra.gmra.mxu1 %vm123_vm1, %v102_v8 }
  0x97   :  { %v99_v9 = vpop.f32.mrf.mxu0 }
 0x113   :  { %v136_v13 = vpop.f32.mrf.mxu1 }
 0x114   :  { %v137_v14 = vadd.f32 %v233_v12, %v136_v13 }
 0x116   :  { %v140_v15 = vmax.f32 %v137_v14, 0.0 }
 0x118   :  { %v141_v16 = vpack.c.bf16 %v140_v15, %v140_v15 }
 0x11a   :  { %220 = vmatmul.msk.bf16.vlgmr.msra.gmra.mxu2 %vm123_vm1, %v141_v16 }
 0x11b   :  { %v138_v17 = vpop.f32.mrf.mxu1 }
 0x19d   :  { %v174_v19 = vpop.f32.mrf.mxu2 }
 0x19e   :  { %v175_v20 = vadd.f32 %v234_v18, %v174_v19 }
 0x1a0   :  { %179 = vst.msk [vmem:[#allocation8] sm:$0xff] %vm178_vm2, %v175_v20 }
 0x1a1   :  { %190 = dma.vmem_to_hbm [thread:$0]  %s186_s26, 128, %s188_s29, [#allocation4]  }
 0x1a5   :  { %v176_v21 = vpop.f32.mrf.mxu2 }
 0x1a6   :  { %335 = dma.done.wait [#allocation4], 128  }
 0x1a7   :  { %336 = vsyncadd [#allocation4], 4294967168 }
 0x1a8   :  { %195 = vsyncpa [#allocation3], 1 }
 0x1a9   :  { %196 = vsyncpa [#allocation6], 1 }
 0x1aa   :  { %197 = vsyncpa [#allocation4], 1 }

// kernel: tpu_custom_call.1
= control target key start
LH: loop header
LB: loop body
LE: loop exit
PB: predicated region body
PF: predicated region fallthrough
CT: control target
= control target key end

     0   :  { %12 = vsyncpa [#allocation3], 0  ;;  %s413_s0 = inlined_call_operand.vmem [shape: bf16[8,16], index: 0, kind: input, shape index: {}]   ;;  %s414_s1 = inlined_call_operand.hbm [shape: bf16[16,32], index: 1, kind: input, shape index: {}]   ;;  %s415_s2 = inlined_call_operand.hbm [shape: f32[1,32], index: 2, kind: input, shape index: {}]   ;;  %s416_s3 = inlined_call_operand.vmem [shape: bf16[32,32], index: 3, kind: input, shape index: {}]   ;;  %s417_s4 = inlined_call_operand.hbm [shape: f32[1,32], index: 4, kind: input, shape index: {}]   ;;  %s418_s5 = inlined_call_operand.vmem [shape: bf16[32,8], index: 5, kind: input, shape index: {}]   ;;  %s419_s6 = inlined_call_operand.vmem [shape: f32[1,8], index: 6, kind: input, shape index: {}]   ;;  %s420_s7 = inlined_call_operand.hbm [shape: f32[8,8], index: 7, kind: output, shape index: {}]  }
   0x1   :  { %13 = vsyncpa [#allocation6], 0  ;;  %s35_s26 = sshll.u32 %s415_s2, 4  ;;  %s36_s26 = int_to_ptr.hbm [resolvable:$true] %s35_s26 }
   0x2   :  { %14 = vsyncpa [#allocation4], 0  ;;  %s337_s27 = smov [#allocation5]   ;;  %s21_s8 = sshll.u32 %s414_s1, 4  ;;  %s22_s8 = int_to_ptr.hbm [resolvable:$true] %s21_s8 }
   0x3   :  { %s37_s28 = sshll.u32 %s337_s27, 4  ;;  %s338_s9 = smov [#allocation2]   ;;  %s38_s28 = int_to_ptr.vmem [resolvable:$true] %s37_s28 }
   0x4   :  { %40 = dma.hbm_to_vmem [thread:$0]  %s36_s26, 16, %s38_s28, [#allocation6]  }
   0x5   :  { %s23_s10 = sshll.u32 %s338_s9, 4  ;;  %s339_s11 = smov 64   ;;  %s24_s10 = int_to_ptr.vmem [resolvable:$true] %s23_s10 }
   0x6   :  { %s340_s12 = smov 4   ;;  %s48_s2 = sshll.u32 %s417_s4, 4  ;;  %s49_s2 = int_to_ptr.hbm [resolvable:$true] %s48_s2 }
   0x7   :  { %29 = dma.hbm_to_vmem [thread:$0]  %s22_s8, 128, %s24_s10, [#allocation3], %s339_s11, %s339_s11, %s340_s12  }
   0x8   :  { %s341_s15 = smov [#allocation7]  }
   0x9   :  { %s50_s16 = sshll.u32 %s341_s15, 4  ;;  %s51_s16 = int_to_ptr.vmem [resolvable:$true] %s50_s16 }
   0xa   :  { %53 = dma.hbm_to_vmem [thread:$0]  %s49_s2, 16, %s51_s16, [#allocation6]  }
   0xb   :  { %331 = dma.done.wait [#allocation3], 128  }
   0xc   :  { %332 = vsyncadd [#allocation3], 4294967168 }
   0xd   :  { %333 = dma.done.wait [#allocation6], 32  }
   0xe   :  { %334 = vsyncadd [#allocation6], 4294967264  ;;  %v221_v0 = vld [vmem:[#allocation2] sm:$0xff]  ;;  %vm84_vm0 = vcmask 130048   ;;  %v223_v2 = vld [vmem:[%s416_s3 + $0x8] sm:$0xff]  ;;  %vm123_vm1 = vcmask 261120  }
   0xf   :  { %95 = vmatpush.bf16.msra.mxu0 %v221_v0  ;;  %v71_v1 = vld [vmem:[%s413_s0] sm:$0xf]  ;;  %133 = vmatpush.bf16.msra.mxu1 %v223_v2  ;;  %v232_v4 = vld [vmem:[#allocation5] ss:$0 sm:$0xff]  ;;  %v233_v12 = vld [vmem:[#allocation7] ss:$0 sm:$0xff] }
  0x10   :  { %v222_v3 = vld [vmem:[%s416_s3] sm:$0xff]  ;;  %v225_v10 = vld [vmem:[%s418_s5 + $0x8] sm:$0xff]  ;;  %s342_s25 = smov [#allocation8]   ;;  %s187_s29 = sshll.u32 %s420_s7, 4  ;;  %vm178_vm2 = vcmask 64512   ;;  %s188_s29 = int_to_ptr.hbm [resolvable:$true] %s187_s29 }
  0x11   :  { %171 = vmatpush.bf16.msra.mxu2 %v225_v10  ;;  %v224_v11 = vld [vmem:[%s418_s5] sm:$0xff]  ;;  %s185_s26 = sshll.u32 %s342_s25, 4  ;;  %s186_s26 = int_to_ptr.vmem [resolvable:$true] %s185_s26 }
  0x12   :  { %202 = vmatmul.msk.bf16.vlgmr.msra.gmra.mxu0 %vm84_vm0, %v71_v1  ;;  %v234_v18 = vld [vmem:[%s419_s6] ss:$0 sm:$0xff] }
  0x13   :  { %134 = vmatpush.bf16.msra.mxu1 %v222_v3 }
  0x15   :  { %172 = vmatpush.bf16.msra.mxu2 %v224_v11 }
  0x8f   :  { %v97_v5 = vpop.f32.mrf.mxu0 }
  0x90   :  { %v98_v6 = vadd.f32 %v232_v4, %v97_v5 }
  0x92   :  { %v101_v7 = vmax.f32 %v98_v6, 0.0 }
  0x94   :  { %v102_v8 = vpack.c.bf16 %v101_v7, %v101_v7 }
  0x96   :  { %211 = vmatmul.msk.bf16.vlgmr.msra.gmra.mxu1 %vm123_vm1, %v102_v8 }
  0x97   :  { %v99_v9 = vpop.f32.mrf.mxu0 }
 0x113   :  { %v136_v13 = vpop.f32.mrf.mxu1 }
 0x114   :  { %v137_v14 = vadd.f32 %v233_v12, %v136_v13 }
 0x116   :  { %v140_v15 = vmax.f32 %v137_v14, 0.0 }
 0x118   :  { %v141_v16 = vpack.c.bf16 %v140_v15, %v140_v15 }
 0x11a   :  { %220 = vmatmul.msk.bf16.vlgmr.msra.gmra.mxu2 %vm123_vm1, %v141_v16 }
 0x11b   :  { %v138_v17 = vpop.f32.mrf.mxu1 }
 0x19d   :  { %v174_v19 = vpop.f32.mrf.mxu2 }
 0x19e   :  { %v175_v20 = vadd.f32 %v234_v18, %v174_v19 }
 0x1a0   :  { %179 = vst.msk [vmem:[#allocation8] sm:$0xff] %vm178_vm2, %v175_v20 }
 0x1a1   :  { %190 = dma.vmem_to_hbm [thread:$0]  %s186_s26, 128, %s188_s29, [#allocation4]  }
 0x1a5   :  { %v176_v21 = vpop.f32.mrf.mxu2 }
 0x1a6   :  { %335 = dma.done.wait [#allocation4], 128  }
 0x1a7   :  { %336 = vsyncadd [#allocation4], 4294967168 }
 0x1a8   :  { %195 = vsyncpa [#allocation3], 1 }
 0x1a9   :  { %196 = vsyncpa [#allocation6], 1 }
 0x1aa   :  { %197 = vsyncpa [#allocation4], 1 }

</bundles_post_ra>
